<compile_context>
chip_gen: v7x
topology: tpu7x:2x2x1
jax: 0.10.0
libtpu: 0.0.40
codegen_flags: <defaults>
</compile_context>

<pallas_src>
import functools

import jax
import jax.numpy as jnp
from jax.experimental import pallas as pl
from jax.experimental.pallas import tpu as pltpu

_LANE = 128
_BF16_SUBLANE = 16  # minimal bf16 tile is (16, 128)


def _round_up(x, m):
    return ((x + m - 1) // m) * m


def _cdiv(a, b):
    return -(-a // b)


# ----------------------------------------------------------------------------
# Deterministic parameter init (mirrors _layer_init: orthogonal weight, 0 bias)
# ----------------------------------------------------------------------------
def _orthogonal(key, out_dim, in_dim, gain=1.414):
    """Orthogonal init for a (out_dim, in_dim) weight, returned as (in, out)."""
    a = jax.random.normal(key, (max(out_dim, in_dim), min(out_dim, in_dim)),
                          jnp.float32)
    q, r = jnp.linalg.qr(a)
    d = jnp.diag(r)
    q = q * jnp.where(d >= 0, 1.0, -1.0)   # unique decomposition; never zeroes a column
    if out_dim < in_dim:
        q = q.T                            # -> (out_dim, in_dim)
    w = gain * q                           # (out_dim, in_dim)
    return w.T.astype(jnp.float32)         # stored as (in, out)


def init_params(key, condition_size, layers, total_classes):
    """List of (W, b) with W:(in,out) f32, b:(out,) f32."""
    sizes = [condition_size] + list(layers) + [int(total_classes)]
    params = []
    for i in range(len(sizes) - 1):
        key, sub = jax.random.split(key)
        w = _orthogonal(sub, sizes[i + 1], sizes[i], gain=1.414)
        b = jnp.zeros((sizes[i + 1],), jnp.float32)
        params.append((w, b))
    return params


# ----------------------------------------------------------------------------
# One-time parameter packing (hoisted out of the hot forward path)
# ----------------------------------------------------------------------------
def pack_params(params):
    """Zero-pad each layer independently and cast weights to bf16 for the MXU.

    Layer 0 keeps its true input width (so x never needs feature padding);
    every output width is padded to a 128-lane boundary. No Dmax inflation.
    """
    packed_w, packed_b = [], []
    for li, (w, b) in enumerate(params):
        din, dout = w.shape
        din_pad = din if li == 0 else _round_up(din, _LANE)
        dout_pad = _round_up(dout, _LANE)
        wp = jnp.zeros((din_pad, dout_pad), jnp.float32).at[:din, :dout].set(w)
        bp = jnp.zeros((1, dout_pad), jnp.float32).at[0, :dout].set(b)
        packed_w.append(wp.astype(jnp.bfloat16))
        packed_b.append(bp)
    return tuple(packed_w), tuple(packed_b)


# ----------------------------------------------------------------------------
# Hardware-dependent knobs (cheap, cached; safe fallbacks)
# ----------------------------------------------------------------------------
@functools.lru_cache(maxsize=None)
def _tanh_dtype():
    """bf16 tanh on v6e/v7x (bf16 EUP); f32 on v5e and older (no bf16 EUP)."""
    try:
        kind = jax.devices()[0].device_kind.lower()
    except Exception:
        return jnp.float32
    return jnp.bfloat16 if ("v6" in kind or "v7" in kind) else jnp.float32


@functools.lru_cache(maxsize=None)
def _buffered_single_supported():
    """Probe (once) whether pipeline_mode=pl.Buffered(1) is accepted, so
    grid-invariant weight/bias blocks can be single-buffered (half the VMEM).
    Falls back to default double-buffering if the build rejects it."""
    if not hasattr(pl, "Buffered"):
        return False

    def _probe_kernel(x_ref, w_ref, o_ref):
        o_ref[...] = x_ref[...] + w_ref[...]

    try:
        out = pl.pallas_call(
            _probe_kernel,
            out_shape=jax.ShapeDtypeStruct((16, _LANE), jnp.float32),
            grid=(2,),
            in_specs=[
                pl.BlockSpec((8, _LANE), lambda i: (i, 0)),
                pl.BlockSpec((8, _LANE), lambda i: (0, 0),
                             pipeline_mode=pl.Buffered(1)),
            ],
            out_specs=pl.BlockSpec((8, _LANE), lambda i: (i, 0)),
            compiler_params=pltpu.CompilerParams(
                dimension_semantics=("parallel",)),
        )(jnp.zeros((16, _LANE), jnp.float32), jnp.ones((8, _LANE), jnp.float32))
        jax.block_until_ready(out)
        return bool(jnp.all(out == 1.0))
    except Exception:   # version-dependent lowering support -> safe fallback
        return False


def _const_block_spec(shape, single_buffer):
    """Full-array block with a constant index_map (grid-invariant operand)."""
    index_map = lambda i, _n=len(shape): (0,) * _n
    if single_buffer:
        return pl.BlockSpec(shape, index_map, pipeline_mode=pl.Buffered(1))
    return pl.BlockSpec(shape, index_map)


# ----------------------------------------------------------------------------
# Batch tiling + VMEM budgeting
# ----------------------------------------------------------------------------
def _choose_batch_tiling(batch, max_block_b):
    """Near-equal batch tiles, rounded to 16 rows (bf16 sublane packing).
    >= 2 grid steps when batch >= 256 so v7x's two TensorCores both work."""
    min_steps = 2 if batch >= 256 else 1
    n_steps = max(min_steps, _cdiv(batch, max_block_b))
    block_b = _round_up(_cdiv(batch, n_steps), _BF16_SUBLANE)
    return block_b, block_b * n_steps, n_steps


def _vmem_limit_bytes(block_b, c_in, out_pad, packed_w, packed_b, weight_bufs):
    """Explicit VMEM budget: in/out tiles double-buffered, weights once or
    twice depending on buffering, plus activation/compiler headroom.
    Clamped to [32 MiB, 64 MiB] (safe for v5e/v6e/v7x)."""
    x_tile = block_b * _round_up(c_in, _LANE) * 4           # f32 input tile
    o_tile = block_b * out_pad * 4                          # f32 output tile
    io = 2 * (x_tile + o_tile)
    wgt = sum(_round_up(w.shape[0], _BF16_SUBLANE) * w.shape[1] * 2
              for w in packed_w)
    bia = sum(8 * b.shape[1] * 4 for b in packed_b)
    widest = max(w.shape[1] for w in packed_w)
    act = 6 * block_b * widest * 4                          # acc/h/compiler temps
    est = io + weight_bufs * (wgt + bia) + act
    return int(min(max(2 * est, 32 * 2 ** 20), 64 * 2 ** 20))


# ----------------------------------------------------------------------------
# Pallas kernel: fused MLP (Linear + Tanh)* + final Linear
# ----------------------------------------------------------------------------
def _make_mlp_kernel(n_layers, tanh_dtype):
    def kernel(*refs):
        x_ref = refs[0]
        w_refs = refs[1:1 + n_layers]
        b_refs = refs[1 + n_layers:1 + 2 * n_layers]
        o_ref = refs[1 + 2 * n_layers]

        h = x_ref[...].astype(jnp.bfloat16)                 # cast in-kernel (no HBM copy)
        # Static unroll: fine for shallow policy MLPs; switch to a stacked
        # slab + lax.fori_loop if n_layers grows beyond ~4.
        for li in range(n_layers):
            acc = jnp.dot(h, w_refs[li][...],               # bf16 x bf16 -> f32 MXU
                          preferred_element_type=jnp.float32)
            acc = acc + b_refs[li][...]                     # f32 bias add
            if li < n_layers - 1:
                # tanh dtype is per-generation (bf16 on v6e/v7x, f32 on v5e).
                h = jnp.tanh(acc.astype(tanh_dtype)).astype(jnp.bfloat16)
            else:
                h = acc                                     # final logits, f32
        o_ref[...] = h.astype(o_ref.dtype)                  # lane-dense unmasked store
    return kernel


def _mlp_logits(x, packed_w, packed_b, total_classes, max_block_b):
    B, C = x.shape
    n_layers = len(packed_w)
    out_pad = packed_w[-1].shape[1]                         # round_up(total, 128)

    block_b, b_pad, n_steps = _choose_batch_tiling(B, max_block_b)
    if b_pad != B:
        x = jnp.pad(x, ((0, b_pad - B), (0, 0)))            # rows only; true feature width

    single_buf = _buffered_single_supported()
    in_specs = [pl.BlockSpec((block_b, C), lambda i: (i, 0))]
    in_specs += [_const_block_spec(w.shape, single_buf) for w in packed_w]
    in_specs += [_const_block_spec(b.shape, single_buf) for b in packed_b]

    vmem = _vmem_limit_bytes(block_b, C, out_pad, packed_w, packed_b,
                             1 if single_buf else 2)

    out = pl.pallas_call(
        _make_mlp_kernel(n_layers, _tanh_dtype()),
        out_shape=jax.ShapeDtypeStruct((b_pad, out_pad), jnp.float32),
        grid=(n_steps,),
        in_specs=in_specs,
        out_specs=pl.BlockSpec((block_b, out_pad), lambda i: (i, 0)),
        compiler_params=pltpu.CompilerParams(
            dimension_semantics=("parallel",),
            vmem_limit_bytes=vmem),
    )(x, *packed_w, *packed_b)

    return out[:B, :total_classes]


@functools.partial(jax.jit, static_argnames=("vect_classes", "max_block_b"))
def _forward_logits(x, packed_w, packed_b, *, vect_classes, max_block_b=512):
    total = int(sum(vect_classes))
    logits = _mlp_logits(x, packed_w, packed_b, total, max_block_b)
    pieces, off = [], 0
    for c in vect_classes:
        pieces.append(logits[:, off:off + c])
        off += c
    return tuple(pieces)


# ----------------------------------------------------------------------------
# Distribution wrapper (glue, mirrors MultiOneHotCategorical)
# ----------------------------------------------------------------------------
class MultiOneHotCategoricalJax:
    def __init__(self, vect_logits):
        self.vect_logits = tuple(vect_logits)
        self.categories_len = tuple(v.shape[-1] for v in vect_logits)

    def log_prob_joint(self, x):
        outs, off = [], 0
        for logits, c in zip(self.vect_logits, self.categories_len):
            sa = x[..., off:off + c]
            off += c
            logp = jax.nn.log_softmax(logits, axis=-1)
            outs.append(jnp.sum(logp * sa, axis=-1))
        return jnp.stack(outs, axis=-1)

    def log_prob(self, x):
        return jnp.sum(self.log_prob_joint(x), axis=-1)

    def sample(self, key):
        keys = jax.random.split(key, len(self.vect_logits))
        pieces = []
        for k, logits, c in zip(keys, self.vect_logits, self.categories_len):
            idx = jax.random.categorical(k, logits, axis=-1)
            pieces.append(jax.nn.one_hot(idx, c, dtype=logits.dtype))
        return jnp.concatenate(pieces, axis=-1)


# ----------------------------------------------------------------------------
# MultiCategoricalModel.forward equivalent
# ----------------------------------------------------------------------------
def multi_categorical_forward(x, packed_w, packed_b, vect_classes, max_block_b=512):
    vect_classes = tuple(int(c) for c in vect_classes)
    _buffered_single_supported()      # warm the (cached) capability probe eagerly
    _tanh_dtype()
    logits = _forward_logits(x, packed_w, packed_b,
                             vect_classes=vect_classes, max_block_b=max_block_b)
    # TODO(synk): torch.distributions.Distribution validation/base machinery has
    # no Pallas equivalent; the wrapper above/below is plain JAX glue.
    return MultiOneHotCategoricalJax(logits)


if __name__ == "__main__":
    key = jax.random.PRNGKey(0)

    condition_size = 16
    layers = (32, 32)
    vect_classes = (3, 4, 5)          # total logits = 12
    batch = 16

    k_params, k_x, k_sample = jax.random.split(key, 3)
    total = int(sum(vect_classes))
    params = init_params(k_params, condition_size, layers, total)
    packed_w, packed_b = pack_params(params)      # one-time packing (hoisted)
    x = jax.random.normal(k_x, (batch, condition_size), jnp.float32)

    dist = multi_categorical_forward(x, packed_w, packed_b, vect_classes)

    # Numerical check against a plain f32 JAX reference MLP (bf16-MXU tolerance).
    h = x
    for li, (w, b) in enumerate(params):
        h = h @ w + b
        if li < len(params) - 1:
            h = jnp.tanh(h)
    logits_ref = h
    logits_ker = jnp.concatenate(dist.vect_logits, axis=-1)
    max_err = float(jnp.max(jnp.abs(logits_ker - logits_ref)))
    assert jnp.allclose(logits_ker, logits_ref, atol=1e-1, rtol=1e-1), max_err

    # Exercise the distribution like the torch version would be used.
    sample = dist.sample(k_sample)
    lp = dist.log_prob(sample)

    for v in dist.vect_logits:
        jax.block_until_ready(v)
    jax.block_until_ready(lp)

    assert dist.vect_logits[0].shape == (batch, 3)
    assert dist.vect_logits[1].shape == (batch, 4)
    assert dist.vect_logits[2].shape == (batch, 5)
    assert lp.shape == (batch,)
    assert bool(jnp.all(jnp.isfinite(lp)))

    print("KERNEL_OK")
</pallas_src>

<mosaic_0001>
module attributes {stable_mosaic.version = 11 : i64} {
  func.func @_probe_kernel(%arg0: i32, %arg1: memref<8x128xf32, #tpu.memory_space<vmem>>, %arg2: memref<8x128xf32, #tpu.memory_space<vmem>>, %arg3: memref<8x128xf32, #tpu.memory_space<vmem>>) attributes {dimension_semantics = [#tpu.dimension_semantics<parallel>], iteration_bounds = array<i64: 2>, scalar_prefetch = 0 : i64, scratch_operands = 0 : i64, tpu.core_type = #tpu.core_type<tc>, window_params = [{transform_indices = @transform_0, window_bounds = array<i64: 8, 128>}, {pipeline_mode = #tpu.pipeline_mode<synchronous>, transform_indices = @transform_1, window_bounds = array<i64: 8, 128>}, {transform_indices = @transform_2, window_bounds = array<i64: 8, 128>}]} {
    %c0 = arith.constant 0 : index
    %c0_0 = arith.constant 0 : index
    %0 = vector.load %arg1[%c0, %c0_0] : memref<8x128xf32, #tpu.memory_space<vmem>>, vector<8x128xf32>
    %c0_1 = arith.constant 0 : index
    %c0_2 = arith.constant 0 : index
    %1 = vector.load %arg2[%c0_1, %c0_2] : memref<8x128xf32, #tpu.memory_space<vmem>>, vector<8x128xf32>
    %2 = arith.addf %0, %1 : vector<8x128xf32>
    %c0_3 = arith.constant 0 : index
    %c0_4 = arith.constant 0 : index
    %3 = vector.load %arg3[%c0_3, %c0_4] : memref<8x128xf32, #tpu.memory_space<vmem>>, vector<8x128xf32>
    tpu.vector_store %arg3[%c0_3, %c0_4], %2 {strides = array<i32>} : memref<8x128xf32, #tpu.memory_space<vmem>>, vector<8x128xf32>,
    return
  }
  func.func @transform_0(%arg0: i32) -> (i32, i32) {
    %c0_i32 = arith.constant 0 : i32
    %c0_i32_0 = arith.constant 0 : i32
    return %arg0, %c0_i32 : i32, i32
  }
  func.func @transform_1(%arg0: i32) -> (i32, i32) {
    %c0_i32 = arith.constant 0 : i32
    %c0_i32_0 = arith.constant 0 : i32
    %c0_i32_1 = arith.constant 0 : i32
    return %c0_i32, %c0_i32_0 : i32, i32
  }
  func.func @transform_2(%arg0: i32) -> (i32, i32) {
    %c0_i32 = arith.constant 0 : i32
    %c0_i32_0 = arith.constant 0 : i32
    return %arg0, %c0_i32 : i32, i32
  }
}

module attributes {stable_mosaic.version = 11 : i64} {
  func.func @kernel(%arg0: i32, %arg1: memref<16x16xf32, #tpu.memory_space<vmem>>, %arg2: memref<16x128xbf16, #tpu.memory_space<vmem>>, %arg3: memref<128x128xbf16, #tpu.memory_space<vmem>>, %arg4: memref<128x128xbf16, #tpu.memory_space<vmem>>, %arg5: memref<1x128xf32, #tpu.memory_space<vmem>>, %arg6: memref<1x128xf32, #tpu.memory_space<vmem>>, %arg7: memref<1x128xf32, #tpu.memory_space<vmem>>, %arg8: memref<16x128xf32, #tpu.memory_space<vmem>>) attributes {dimension_semantics = [#tpu.dimension_semantics<parallel>], iteration_bounds = array<i64: 1>, scalar_prefetch = 0 : i64, scratch_operands = 0 : i64, tpu.core_type = #tpu.core_type<tc>, window_params = [{transform_indices = @transform_0, window_bounds = array<i64: 16, 16>}, {pipeline_mode = #tpu.pipeline_mode<synchronous>, transform_indices = @transform_1, window_bounds = array<i64: 16, 128>}, {pipeline_mode = #tpu.pipeline_mode<synchronous>, transform_indices = @transform_2, window_bounds = array<i64: 128, 128>}, {pipeline_mode = #tpu.pipeline_mode<synchronous>, transform_indices = @transform_3, window_bounds = array<i64: 128, 128>}, {pipeline_mode = #tpu.pipeline_mode<synchronous>, transform_indices = @transform_4, window_bounds = array<i64: 1, 128>}, {pipeline_mode = #tpu.pipeline_mode<synchronous>, transform_indices = @transform_5, window_bounds = array<i64: 1, 128>}, {pipeline_mode = #tpu.pipeline_mode<synchronous>, transform_indices = @transform_6, window_bounds = array<i64: 1, 128>}, {transform_indices = @transform_7, window_bounds = array<i64: 16, 128>}]} {
    %c0 = arith.constant 0 : index
    %c0_0 = arith.constant 0 : index
    %0 = vector.load %arg1[%c0, %c0_0] : memref<16x16xf32, #tpu.memory_space<vmem>>, vector<16x16xf32>
    %1 = arith.truncf %0 : vector<16x16xf32> to vector<16x16xbf16>
    %c0_1 = arith.constant 0 : index
    %c0_2 = arith.constant 0 : index
    %2 = vector.load %arg2[%c0_1, %c0_2] : memref<16x128xbf16, #tpu.memory_space<vmem>>, vector<16x128xbf16>
    %cst = arith.constant dense<0.000000e+00> : vector<16x128xf32>
    %3 = tpu.matmul %1, %2, %cst {dimension_numbers = #tpu.dot_dimension_numbers<[1], [0], [0], [1], [0, 0, 1, 1], [], []>} : vector<16x16xbf16>, vector<16x128xbf16>, vector<16x128xf32> -> vector<16x128xf32>
    %c0_3 = arith.constant 0 : index
    %c0_4 = arith.constant 0 : index
    %4 = vector.load %arg5[%c0_3, %c0_4] : memref<1x128xf32, #tpu.memory_space<vmem>>, vector<1x128xf32>
    %5 = vector.broadcast %4 : vector<1x128xf32> to vector<16x128xf32>
    %6 = arith.addf %3, %5 : vector<16x128xf32>
    %7 = math.tanh %6 : vector<16x128xf32>
    %8 = arith.truncf %7 : vector<16x128xf32> to vector<16x128xbf16>
    %c0_5 = arith.constant 0 : index
    %c0_6 = arith.constant 0 : index
    %9 = vector.load %arg3[%c0_5, %c0_6] : memref<128x128xbf16, #tpu.memory_space<vmem>>, vector<128x128xbf16>
    %cst_7 = arith.constant dense<0.000000e+00> : vector<16x128xf32>
    %10 = tpu.matmul %8, %9, %cst_7 {dimension_numbers = #tpu.dot_dimension_numbers<[1], [0], [0], [1], [0, 0, 1, 1], [], []>} : vector<16x128xbf16>, vector<128x128xbf16>, vector<16x128xf32> -> vector<16x128xf32>
    %c0_8 = arith.constant 0 : index
    %c0_9 = arith.constant 0 : index
    %11 = vector.load %arg6[%c0_8, %c0_9] : memref<1x128xf32, #tpu.memory_space<vmem>>, vector<1x128xf32>
    %12 = vector.broadcast %11 : vector<1x128xf32> to vector<16x128xf32>
    %13 = arith.addf %10, %12 : vector<16x128xf32>
    %14 = math.tanh %13 : vector<16x128xf32>
    %15 = arith.truncf %14 : vector<16x128xf32> to vector<16x128xbf16>
    %c0_10 = arith.constant 0 : index
    %c0_11 = arith.constant 0 : index
    %16 = vector.load %arg4[%c0_10, %c0_11] : memref<128x128xbf16, #tpu.memory_space<vmem>>, vector<128x128xbf16>
    %cst_12 = arith.constant dense<0.000000e+00> : vector<16x128xf32>
    %17 = tpu.matmul %15, %16, %cst_12 {dimension_numbers = #tpu.dot_dimension_numbers<[1], [0], [0], [1], [0, 0, 1, 1], [], []>} : vector<16x128xbf16>, vector<128x128xbf16>, vector<16x128xf32> -> vector<16x128xf32>
    %c0_13 = arith.constant 0 : index
    %c0_14 = arith.constant 0 : index
    %18 = vector.load %arg7[%c0_13, %c0_14] : memref<1x128xf32, #tpu.memory_space<vmem>>, vector<1x128xf32>
    %19 = vector.broadcast %18 : vector<1x128xf32> to vector<16x128xf32>
    %20 = arith.addf %17, %19 : vector<16x128xf32>
    %c0_15 = arith.constant 0 : index
    %c0_16 = arith.constant 0 : index
    %21 = vector.load %arg8[%c0_15, %c0_16] : memref<16x128xf32, #tpu.memory_space<vmem>>, vector<16x128xf32>
    tpu.vector_store %arg8[%c0_15, %c0_16], %20 {strides = array<i32>} : memref<16x128xf32, #tpu.memory_space<vmem>>, vector<16x128xf32>,
    return
  }
  func.func @transform_0(%arg0: i32) -> (i32, i32) {
    %c0_i32 = arith.constant 0 : i32
    %c0_i32_0 = arith.constant 0 : i32
    return %arg0, %c0_i32 : i32, i32
  }
  func.func @transform_1(%arg0: i32) -> (i32, i32) {
    %c0_i32 = arith.constant 0 : i32
    %c0_i32_0 = arith.constant 0 : i32
    %c0_i32_1 = arith.constant 0 : i32
    return %c0_i32, %c0_i32_0 : i32, i32
  }
  func.func @transform_2(%arg0: i32) -> (i32, i32) {
    %c0_i32 = arith.constant 0 : i32
    %c0_i32_0 = arith.constant 0 : i32
    %c0_i32_1 = arith.constant 0 : i32
    return %c0_i32, %c0_i32_0 : i32, i32
  }
  func.func @transform_3(%arg0: i32) -> (i32, i32) {
    %c0_i32 = arith.constant 0 : i32
    %c0_i32_0 = arith.constant 0 : i32
    %c0_i32_1 = arith.constant 0 : i32
    return %c0_i32, %c0_i32_0 : i32, i32
  }
  func.func @transform_4(%arg0: i32) -> (i32, i32) {
    %c0_i32 = arith.constant 0 : i32
    %c0_i32_0 = arith.constant 0 : i32
    %c0_i32_1 = arith.constant 0 : i32
    return %c0_i32, %c0_i32_0 : i32, i32
  }
  func.func @transform_5(%arg0: i32) -> (i32, i32) {
    %c0_i32 = arith.constant 0 : i32
    %c0_i32_0 = arith.constant 0 : i32
    %c0_i32_1 = arith.constant 0 : i32
    return %c0_i32, %c0_i32_0 : i32, i32
  }
  func.func @transform_6(%arg0: i32) -> (i32, i32) {
    %c0_i32 = arith.constant 0 : i32
    %c0_i32_0 = arith.constant 0 : i32
    %c0_i32_1 = arith.constant 0 : i32
    return %c0_i32, %c0_i32_0 : i32, i32
  }
  func.func @transform_7(%arg0: i32) -> (i32, i32) {
    %c0_i32 = arith.constant 0 : i32
    %c0_i32_0 = arith.constant 0 : i32
    return %arg0, %c0_i32 : i32, i32
  }
}

</mosaic_0001>

<bundles_post_ra>
// kernel: tpu_custom_call.1
= control target key start
LH: loop header
LB: loop body
LE: loop exit
PB: predicated region body
PF: predicated region fallthrough
CT: control target
= control target key end

     0   :  { %7 = vsyncpa [#allocation3], 0  ;;  %s690_s0 = inlined_call_operand.hbm [shape: f32[16,128], index: 0, kind: input, shape index: {}]   ;;  %s691_s1 = inlined_call_operand.hbm [shape: f32[8,128], index: 1, kind: input, shape index: {}]   ;;  %s692_s2 = inlined_call_operand.hbm [shape: f32[16,128], index: 2, kind: output, shape index: {}]  }
   0x1   :  { %9 = vsyncpa [#allocation3 + $0x1], 0 }
   0x2   :  { %10 = vsyncpa [#allocation6], 0 }
   0x3   :  { %11 = vsyncpa [#allocation4], 0 }
   0x4   :  { %13 = vsyncpa [#allocation4 + $0x1], 0  ;;  %s489_s9 = smov 0   ;;  %s491_s10 = smov 0  }
   0x5   :  { %s493_s11 = smov 0   ;;  %s495_s12 = smov 0  }
   0x6 LB: > { %s510_s13 = sadd.s32 4294967295, %s469_s12   ;;  %s270_s14 = sadd.s32 4294967294, %s469_s12   ;;  %s469_s12 = sphi %s495_s12, %s716_s12   ;;  %s465_s11 = sphi %s493_s11, %s715_s11   ;;  %s461_s10 = sphi %s491_s10, %s714_s10   ;;  %s457_s9 = sphi %s489_s9, %s713_s9  }
   0x7   : > { %p39_p0 = scmp.ne.s32.totalorder %s461_s10, %s457_s9  ;;  %p693_p1 = scmp.eq.s32.totalorder %s510_s13, 0 }
   0x8   : > { %p90_p3 = scmp.eq.s32.totalorder %s270_s14, 1  ;;  %p271_p5 = scmp.ge.s32.totalorder %s469_s12, 1 }
   0x9   : > { %p519_p4 = por %p693_p1, %p39_p0  ;;  %p97_p7 = scmp.lt.s32.totalorder %s469_s12, 3 }
   0xa   : > { %p524_p6 = por %p90_p3, %p39_p0  ;;  %s471_s18 = smov [#allocation5]  }
   0xb   : > { %s696_s15 = scalar_select %p519_p4, 1, 0 }
   0xc   : > { %s697_s16 = scalar_select %p524_p6, 1, 0 }
   0xd   : > { %p529_p8 = pnand %p271_p5, %p97_p7  ;;  %s110_s19 = sshll.u32 %s471_s18, 4  ;;  %s111_s19 = int_to_ptr.vmem [resolvable:$true] %s110_s19 }
   0xe   : > { %s537_s20 = sadd.s32 1, %s469_s12   ;;  %s26_s24 = sadd.s32 1, %s465_s11 }
   0xf   : > { %s698_s17 = scalar_select %p529_p8, 1, 0 }
  0x10   : > { %p292_p10 = pneg %p529_p8  ;;  %s23_s22 = ssub.s32 %s469_s12, %s537_s20 }
  0x11   : > { %p547_p12 = scmp.eq.s32.totalorder %s23_s22, 0  ;;  %s341_s27 = scalar_lea.hbm %s691_s1, 128 }
  0x12   : > { %p541_p11 = pnand %p292_p10, %p693_p1  ;;  %p342_p0 = scmp.ne.s32.totalorder %s691_s1, %s341_s27 }
  0x13   : > { %s700_s23 = scalar_select %p547_p12, 1, 0 }
  0x14   : > { %p343_p3 = pneg %p541_p11  ;;  %p348_p10 = scmp.lt.u32.totalorder %s341_s27, %s691_s1 }
  0x16   : > { %p344_p5 = pnand %p343_p3, %p342_p0 }
  0x18   : > { %p345_p7 = pneg %p344_p5 }
  0x1a   : > { %p350_p9 = pnand %p348_p10, %p345_p7 }
  0x1c   : > { %353 = shalt.err (!%p350_p9)
}
  0x1d   : > { %s354_s4 = scalar_lea.vmem %s111_s19, 128  ;;  %p362_p6 = scmp.lt.s32.totalorder %s111_s19, %s111_s19 }
  0x1e   : > { %p355_p1 = scmp.ne.s32.totalorder %s111_s19, %s354_s4  ;;  %p363_p4 = scmp.lt.s32.totalorder %s354_s4, %s354_s4 }
  0x20   : > { %p357_p2 = pnand %p355_p1, %p343_p3  ;;  %p364_p8 = por %p363_p4, %p362_p6 }
  0x22   : > { %p358_p13 = pneg %p357_p2 }
  0x24   : > { %p365_p12 = pnand %p364_p8, %p358_p13 }
  0x26   : > { %368 = shalt.err (!%p365_p12)
}
  0x27   : > { %295 = dma.hbm_to_vmem [thread:$0]  (!%p541_p11), %s691_s1, 128, %s111_s19, [#allocation6]  }
  0x28   : > { %p701_p1 = scmp.ne.s32.totalorder %s700_s23, 0  ;;  %p34_p2 = scmp.eq.s32.totalorder %s469_s12, 0 }
  0x29   : > { %p702_p4 = scmp.ne.s32.totalorder %s465_s11, %s461_s10  ;;  %p703_p6 = scmp.eq.s32.totalorder %s510_s13, 1 }
  0x2a   : > { %s573_s7 = scalar_select %p701_p1, %s465_s11, %s26_s24  }
  0x2b   : > { %p581_p8 = por %p703_p6, %p702_p4  ;;  %p305_p9 = scmp.lt.s32.totalorder %s469_s12, 2 }
  0x2c   : > { %s121_s14 = sand.u32 1, %s465_s11   ;;  %p705_p12 = pmov %p702_p4 }
  0x2d   : > { %s274_s18 = sshll.u32 %s121_s14, 3  ;;  %s275_s21 = sshll.u32 %s469_s12, 7 }
  0x2e   : > { %p35_p13 = por %p34_p2, %p705_p12  ;;  %s594_s19 = scalar_lea.hbm %s690_s0, %s275_s21 }
  0x2f   : > { %s125_s23 = scalar_lea.vmem [#allocation2], %s274_s18  ;;  %s122_s27 = scalar_lea.sflag [#allocation3], %s121_s14 }
  0x30   : > { %s132_s24 = sshll.u32 %s125_s23, 4  ;;  %p596_p11 = pnand %p305_p9, %p35_p13  ;;  %s600_s24 = int_to_ptr.vmem [resolvable:$true] %s132_s24 }
  0x31   : > { %s369_s28 = scalar_lea.hbm %s594_s19, 128  ;;  %s374_s3 = scalar_lea.hbm %s690_s0, 256 }
  0x32   : > { %p370_p0 = scmp.ne.s32.totalorder %s594_s19, %s369_s28  ;;  %p371_p3 = pneg %p596_p11 }
  0x33   : > { %p375_p10 = scmp.lt.u32.totalorder %s594_s19, %s690_s0  ;;  %p376_p1 = scmp.lt.u32.totalorder %s374_s3, %s369_s28 }
  0x34   : > { %p372_p5 = pnand %p371_p3, %p370_p0  ;;  %p378_p4 = scmp.lt.u32.totalorder %s369_s28, %s594_s19 }
  0x35   : > { %p377_p2 = por %p376_p1, %p375_p10 }
  0x36   : > { %p373_p7 = pneg %p372_p5 }
  0x37   : > { %p379_p6 = por %p378_p4, %p377_p2 }
  0x39   : > { %p380_p9 = pnand %p379_p6, %p373_p7 }
  0x3b   : > { %383 = shalt.err (!%p380_p9)
}
  0x3c   : > { %s384_s6 = scalar_lea.vmem %s600_s24, 128  ;;  %s472_s14 = smov [#allocation2]  }
  0x3d   : > { %p385_p12 = scmp.ne.s32.totalorder %s600_s24, %s384_s6  ;;  %s389_s18 = sshll.u32 %s472_s14, 4  ;;  %s390_s18 = int_to_ptr.vmem [resolvable:$false] %s389_s18 }
  0x3e   : > { %s391_s21 = scalar_lea.vmem %s390_s18, 256  ;;  %p392_p5 = scmp.lt.s32.totalorder %s600_s24, %s390_s18 }
  0x3f   : > { %p387_p13 = pnand %p385_p12, %p371_p3  ;;  %p393_p10 = scmp.lt.s32.totalorder %s391_s21, %s384_s6 }
  0x41   : > { %p388_p0 = pneg %p387_p13  ;;  %p394_p1 = por %p393_p10, %p392_p5 }
  0x43   : > { %p395_p2 = pnand %p394_p1, %p388_p0 }
  0x45   : > { %398 = shalt.err (!%p395_p2)
}
  0x46   : > { %299 = dma.hbm_to_vmem [thread:$0]  (!%p596_p11), %s594_s19, 128, %s600_s24, %s122_s27  }
  0x47   : > { %p707_p7 = scmp.ne.s32.totalorder %s698_s17, 0 }
  0x48   : > { %s630_s22 = sand.u32 (!%p707_p7), 1, %s461_s10   ;;  %p708_p3 = scmp.ne.s32.totalorder (!%p707_p7), %s696_s15, 0 }
  0x49   : > { %141 = sbr.rel (%p707_p7) target bundleno = 109 (0x6d), region = 28  ;;  %s277_s25 = sshll.u32 (!%p707_p7), %s630_s22, 3 }
  0x4a   : > { %s144_s23 = scalar_lea.sflag (!%p707_p7), [#allocation3], %s630_s22  ;;  %s147_s28 = scalar_lea.vmem (!%p707_p7), [#allocation2], %s277_s25 }
  0x50   : > { %444 = dma.done.wait (%p708_p3), %s144_s23, 128  }
  0x51   : > { %446 = vsyncadd (%p708_p3), %s144_s23, 4294967168  ;;  %p709_p4 = scmp.eq.s32.totalorder %s510_s13, 0 }
  0x53   : > { %448 = dma.done.wait (%p709_p4), [#allocation6], 128   ;;  %p710_p11 = pmov %p709_p4 }
  0x54   : > { %s171_s17 = scalar_lea.vmem [#allocation7], %s277_s25  ;;  %s281_s24 = sshll.u32 %s510_s13, 7  ;;  %v172_v0 = vld [vmem:[%s147_s28] sm:$0xff]  ;;  %v173_v1 = vld [vmem:[#allocation5] sm:$0xff] }
  0x55   : > { %450 = vsyncadd (%p710_p11), [#allocation6], 4294967168  ;;  %s190_s19 = sshll.u32 %s171_s17, 4  ;;  %v174_v2 = vadd.f32 %v173_v1, %v172_v0  ;;  %s648_s27 = scalar_lea.hbm %s692_s2, %s281_s24  ;;  %s643_s19 = int_to_ptr.vmem [resolvable:$true] %s190_s19 }
  0x56   : > { %s177_s29 = scalar_lea.sflag [#allocation4], %s630_s22  ;;  %s399_s30 = scalar_lea.vmem %s643_s19, 128 }
  0x57   : > { %175 = vst [vmem:[%s171_s17] sm:$0xff] %v174_v2  ;;  %p400_p6 = scmp.ne.s32.totalorder %s643_s19, %s399_s30  ;;  %s473_s13 = smov [#allocation7]  }
  0x58   : > { %s403_s3 = sshll.u32 %s473_s13, 4  ;;  %s404_s3 = int_to_ptr.vmem [resolvable:$false] %s403_s3 }
  0x59   : > { %p401_p9 = pnand %p400_p6, %p581_p8  ;;  %s405_s4 = scalar_lea.vmem %s404_s3, 256 }
  0x5a   : > { %p406_p13 = scmp.lt.s32.totalorder %s643_s19, %s404_s3  ;;  %p407_p0 = scmp.lt.s32.totalorder %s405_s4, %s399_s30 }
  0x5b   : > { %p402_p12 = pneg %p401_p9 }
  0x5c   : > { %p408_p5 = por %p407_p0, %p406_p13 }
  0x5e   : > { %p409_p10 = pnand %p408_p5, %p402_p12 }
  0x60   : > { %412 = shalt.err (!%p409_p10)
}
  0x61   : > { %s413_s5 = scalar_lea.hbm %s648_s27, 128  ;;  %s417_s18 = scalar_lea.hbm %s692_s2, 256 }
  0x62   : > { %p414_p1 = scmp.ne.s32.totalorder %s648_s27, %s413_s5  ;;  %p418_p3 = scmp.lt.u32.totalorder %s648_s27, %s692_s2 }
  0x63   : > { %p419_p4 = scmp.lt.u32.totalorder %s417_s18, %s413_s5  ;;  %p421_p6 = scmp.lt.u32.totalorder %s413_s5, %s648_s27 }
  0x64   : > { %p415_p2 = pnand %p414_p1, %p581_p8 }
  0x65   : > { %p420_p11 = por %p419_p4, %p418_p3 }
  0x66   : > { %p416_p7 = pneg %p415_p2 }
  0x67   : > { %p422_p9 = por %p421_p6, %p420_p11 }
  0x69   : > { %p423_p12 = pnand %p422_p9, %p416_p7 }
  0x6b   : > { %426 = shalt.err (!%p423_p12)
}
  0x6c   : > { %290 = dma.vmem_to_hbm [thread:$0]  (%p581_p8), %s643_s19, 128, %s648_s27, %s177_s29  }
  0x6d PF: > { %s202_s25 = sand.u32 1, %s457_s9   ;;  %p711_p13 = scmp.ne.s32.totalorder %s697_s16, 0 }
  0x6e   : > { %p712_p0 = scmp.ge.s32.totalorder %s469_s12, 2  ;;  %s203_s23 = scalar_lea.sflag [#allocation4], %s202_s25 }
  0x70   : > { %p301_p5 = pnand %p712_p0, %p711_p13 }
  0x72   : > { %452 = dma.done.wait (!%p301_p5), %s203_s23, 128  }
  0x73   : > { %454 = vsyncadd (!%p301_p5), %s203_s23, 4294967168  ;;  %p16_p10 = scmp.ge.s32.totalorder %s537_s20, 4   ;;  %s713_s9 = smov %s461_s10 }
  0x74   : > { %s714_s10 = smov %s465_s11  ;;  %s715_s11 = smov %s573_s7 }
  0x75   : > { %s716_s12 = smov %s537_s20  ;;  %18 = sbr.rel (!%p16_p10) target bundleno = 6 (0x6), region = 77 }
  0x7c   :  { %208 = vsyncpa [#allocation3], 1 }
  0x7d   :  { %210 = vsyncpa [#allocation3 + $0x1], 1 }
  0x7e   :  { %211 = vsyncpa [#allocation6], 1 }
  0x7f   :  { %212 = vsyncpa [#allocation4], 1 }
  0x80   :  { %214 = vsyncpa [#allocation4 + $0x1], 1 }

// kernel: _forward_logits.1
= control target key start
LH: loop header
LB: loop body
LE: loop exit
PB: predicated region body
PF: predicated region fallthrough
CT: control target
= control target key end

     0   :  { %12 = vsyncpa [#allocation3], 0  ;;  %s752_s0 = inlined_call_operand.hbm [shape: f32[16,16], index: 0, kind: input, shape index: {}]   ;;  %s753_s1 = inlined_call_operand.hbm [shape: bf16[16,128], index: 1, kind: input, shape index: {}]   ;;  %s754_s2 = inlined_call_operand.hbm [shape: bf16[128,128], index: 2, kind: input, shape index: {}]   ;;  %s755_s3 = inlined_call_operand.hbm [shape: bf16[128,128], index: 3, kind: input, shape index: {}]   ;;  %s756_s4 = inlined_call_operand.vmem [shape: f32[1,128], index: 4, kind: input, shape index: {}]   ;;  %s757_s5 = inlined_call_operand.vmem [shape: f32[1,128], index: 5, kind: input, shape index: {}]   ;;  %s758_s6 = inlined_call_operand.vmem [shape: f32[1,128], index: 6, kind: input, shape index: {}]   ;;  %s759_s7 = inlined_call_operand.vmem [shape: f32[16,128], index: 7, kind: output, shape index: {}]  }
   0x1   :  { %13 = vsyncpa [#allocation5], 0 }
   0x2   :  { %14 = vsyncpa [#allocation8], 0  ;;  %s600_s24 = smov [#allocation4]   ;;  %s506_s28 = scalar_lea.hbm %s753_s1, 128 }
   0x3   :  { %s32_s25 = sshll.u32 %s600_s24, 4  ;;  %p507_p0 = scmp.ne.s32.totalorder %s753_s1, %s506_s28  ;;  %s33_s25 = int_to_ptr.vmem [resolvable:$true] %s32_s25 }
   0x4   :  { %p510_p1 = scmp.lt.u32.totalorder %s506_s28, %s753_s1 }
   0x6   :  { %p512_p2 = pnand %p510_p1, %p507_p0 }
   0x8   :  { %515 = shalt.err (!%p512_p2)
}
   0x9   :  { %s516_s10 = scalar_lea.vmem %s33_s25, 128  ;;  %p521_p4 = scmp.lt.s32.totalorder %s33_s25, %s33_s25 }
   0xa   :  { %p517_p3 = scmp.ne.s32.totalorder %s33_s25, %s516_s10  ;;  %p522_p5 = scmp.lt.s32.totalorder %s516_s10, %s516_s10 }
   0xc   :  { %p523_p6 = por %p522_p5, %p521_p4 }
   0xe   :  { %p524_p7 = pnand %p523_p6, %p517_p3 }
  0x10   :  { %527 = shalt.err (!%p524_p7)
}
  0x11   :  { %s601_s11 = smov 64   ;;  %s602_s12 = smov 4  }
  0x12   :  { %38 = dma.hbm_to_vmem [thread:$0]  %s753_s1, 128, %s33_s25, [#allocation5], %s601_s11, %s601_s11, %s602_s12  }
  0x13   :  { %s603_s15 = smov [#allocation2]   ;;  %s528_s19 = scalar_lea.hbm %s752_s0, 256 }
  0x14   :  { %s20_s16 = sshll.u32 %s603_s15, 4  ;;  %p529_p8 = scmp.ne.s32.totalorder %s752_s0, %s528_s19  ;;  %s21_s16 = int_to_ptr.vmem [resolvable:$true] %s20_s16 }
  0x15   :  { %p532_p9 = scmp.lt.u32.totalorder %s528_s19, %s752_s0 }
  0x17   :  { %p534_p10 = pnand %p532_p9, %p529_p8 }
  0x19   :  { %537 = shalt.err (!%p534_p10)
}
  0x1a   :  { %s538_s24 = scalar_lea.vmem %s21_s16, 256  ;;  %p543_p12 = scmp.lt.s32.totalorder %s21_s16, %s21_s16 }
  0x1b   :  { %p539_p11 = scmp.ne.s32.totalorder %s21_s16, %s538_s24  ;;  %p544_p13 = scmp.lt.s32.totalorder %s538_s24, %s538_s24 }
  0x1d   :  { %p545_p0 = por %p544_p13, %p543_p12 }
  0x1f   :  { %p546_p1 = pnand %p545_p0, %p539_p11 }
  0x21   :  { %549 = shalt.err (!%p546_p1)
}
  0x22   :  { %s604_s1 = smov 128   ;;  %s605_s25 = smov 8  }
  0x23   :  { %26 = dma.hbm_to_vmem [thread:$0]  %s752_s0, 256, %s21_s16, [#allocation3], %s604_s1, %s604_s1, %s605_s25  }
  0x24   :  { %s606_s28 = smov [#allocation6]   ;;  %s607_s30 = smov [#allocation7]  }
  0x25   :  { %s44_s29 = sshll.u32 %s606_s28, 4  ;;  %s56_s8 = sshll.u32 %s607_s30, 4  ;;  %s45_s29 = int_to_ptr.vmem [resolvable:$true] %s44_s29  ;;  %s677_s8 = int_to_ptr.vmem [resolvable:$true] %s56_s8 }
  0x26   :  { %s550_s13 = scalar_lea.hbm %s754_s2, 1024 }
  0x27   :  { %p551_p2 = scmp.ne.s32.totalorder %s754_s2, %s550_s13  ;;  %p554_p3 = scmp.lt.u32.totalorder %s550_s13, %s754_s2 }
  0x29   :  { %p556_p4 = pnand %p554_p3, %p551_p2 }
  0x2b   :  { %559 = shalt.err (!%p556_p4)
}
  0x2c   :  { %s560_s0 = scalar_lea.vmem %s45_s29, 1024  ;;  %p565_p6 = scmp.lt.s32.totalorder %s45_s29, %s45_s29 }
  0x2d   :  { %p561_p5 = scmp.ne.s32.totalorder %s45_s29, %s560_s0  ;;  %p566_p7 = scmp.lt.s32.totalorder %s560_s0, %s560_s0 }
  0x2f   :  { %p567_p8 = por %p566_p7, %p565_p6 }
  0x31   :  { %p568_p9 = pnand %p567_p8, %p561_p5 }
  0x33   :  { %571 = shalt.err (!%p568_p9)
}
  0x34   :  { %50 = dma.hbm_to_vmem [thread:$0]  %s754_s2, 1024, %s45_s29, [#allocation5], %s601_s11, %s601_s11, %s602_s12  }
  0x35   :  { %s572_s22 = scalar_lea.hbm %s755_s3, 1024 }
  0x36   :  { %p573_p10 = scmp.ne.s32.totalorder %s755_s3, %s572_s22  ;;  %p576_p11 = scmp.lt.u32.totalorder %s572_s22, %s755_s3 }
  0x38   :  { %p578_p12 = pnand %p576_p11, %p573_p10 }
  0x3a   :  { %581 = shalt.err (!%p578_p12)
}
  0x3b   :  { %s582_s26 = scalar_lea.vmem %s677_s8, 1024  ;;  %p587_p0 = scmp.lt.s32.totalorder %s677_s8, %s677_s8 }
  0x3c   :  { %p583_p13 = scmp.ne.s32.totalorder %s677_s8, %s582_s26  ;;  %p588_p1 = scmp.lt.s32.totalorder %s582_s26, %s582_s26 }
  0x3e   :  { %p589_p2 = por %p588_p1, %p587_p0 }
  0x40   :  { %p590_p3 = pnand %p589_p2, %p583_p13 }
  0x42   :  { %593 = shalt.err (!%p590_p3)
}
  0x43   :  { %62 = dma.hbm_to_vmem [thread:$0]  %s755_s3, 1024, %s677_s8, [#allocation8], %s601_s11, %s601_s11, %s602_s12  }
  0x44   :  { %594 = dma.done.wait [#allocation3], 256  }
  0x45   :  { %595 = vsyncadd [#allocation3], 4294967040 }
  0x46   :  { %596 = dma.done.wait [#allocation5], 1152  }
  0x47   :  { %597 = vsyncadd [#allocation5], 4294966144 }
  0x48   :  { %598 = dma.done.wait [#allocation8], 1024  }
  0x49   :  { %599 = vsyncadd [#allocation8], 4294966272  ;;  %v608_v0 = vmov 0.0   ;;  %vm609_vm0 = vmmov 0   ;;  %v481_v1 = vld [vmem:[#allocation4] sm:$0xff]   ;;  %v82_v2 = vld [vmem:[#allocation2] sm:$0xff] }
  0x4a   :  { %425 = vmatprep.subr.bf16.mxu0 %v608_v0  ;;  %427 = vmatprep.mubr.msk.bf16.mxu0 %vm609_vm0, %v608_v0  ;;  %v83_v3 = vld [vmem:[#allocation2 + $0x8] sm:$0xff]  ;;  %vm100_vm1 = vcmask 130048   ;;  %v482_v5 = vld [vmem:[#allocation6] sm:$0xff]   ;;  %v483_v6 = vld [vmem:[#allocation6 + $0x8] sm:$0xff]  }
  0x4b   :  { %431 = vmatprep.subr.bf16.mxu1 %v608_v0  ;;  %447 = vmatprep.mubr.msk.bf16.mxu1 %vm609_vm0, %v608_v0  ;;  %v84_v4 = vpack.c.bf16 %v83_v3, %v82_v2  ;;  %v484_v7 = vld [vmem:[#allocation6 + $0x10] sm:$0xff]   ;;  %v485_v8 = vld [vmem:[#allocation6 + $0x18] sm:$0xff]   ;;  %v486_v9 = vld [vmem:[#allocation6 + $0x20] sm:$0xff]  }
  0x4c   :  { %426 = vmatpush3.bf16.msra.mxu0 %v481_v1  ;;  %432 = vmatpush3.bf16.msra.mxu1 %v482_v5  ;;  %v487_v10 = vld [vmem:[#allocation6 + $0x28] sm:$0xff]   ;;  %v488_v11 = vld [vmem:[#allocation6 + $0x30] sm:$0xff]   ;;  %v489_v12 = vld [vmem:[#allocation6 + $0x38] sm:$0xff]  }
  0x4d   :  { %451 = vmatprep.subr.bf16.mxu0 %v608_v0  ;;  %433 = vmatprep.subr.bf16.mxu1 %v608_v0  ;;  %v490_v13 = vld [vmem:[#allocation7] sm:$0xff]   ;;  %v491_v14 = vld [vmem:[#allocation7 + $0x8] sm:$0xff]   ;;  %v492_v15 = vld [vmem:[#allocation7 + $0x10] sm:$0xff]  }
  0x4e   :  { %v493_v16 = vld [vmem:[#allocation7 + $0x18] sm:$0xff]   ;;  %v384_v17 = vld [vmem:[%s756_s4] ss:$0 sm:$0xff]  ;;  %v494_v27 = vld [vmem:[#allocation7 + $0x20] sm:$0xff]  }
  0x4f   :  { %428 = vmatmul.mubr.msk.bf16.vlgmr.msra.gmra.mrb[0].mxu0 %vm100_vm1, %v84_v4  ;;  %v495_v28 = vld [vmem:[#allocation7 + $0x28] sm:$0xff]   ;;  %v496_v29 = vld [vmem:[#allocation7 + $0x30] sm:$0xff]   ;;  %v497_v30 = vld [vmem:[#allocation7 + $0x38] sm:$0xff]  }
  0x50   :  { %467 = vmatprep.mubr.msk.bf16.mxu0 %vm609_vm0, %v608_v0  ;;  %434 = vmatpush3.bf16.msra.mxu1 %v483_v6  ;;  %v387_v31 = vld [vmem:[%s757_s5] ss:$0 sm:$0xff] }
  0x51   :  { %435 = vmatprep.subr.bf16.mxu1 %v608_v0  ;;  %452 = vmatpush3.bf16.msra.mxu0 %v490_v13  ;;  %v396_v41 = vld [vmem:[%s758_s6] ss:$0 sm:$0xff] }
  0x52   :  { %453 = vmatprep.subr.bf16.mxu0 %v608_v0 }
  0x54   :  { %436 = vmatpush3.bf16.msra.mxu1 %v484_v7 }
  0x55   :  { %437 = vmatprep.subr.bf16.mxu1 %v608_v0  ;;  %454 = vmatpush3.bf16.msra.mxu0 %v491_v14 }
  0x56   :  { %455 = vmatprep.subr.bf16.mxu0 %v608_v0 }
  0x58   :  { %438 = vmatpush3.bf16.msra.mxu1 %v485_v8 }
  0x59   :  { %439 = vmatprep.subr.bf16.mxu1 %v608_v0  ;;  %456 = vmatpush3.bf16.msra.mxu0 %v492_v15 }
  0x5a   :  { %457 = vmatprep.subr.bf16.mxu0 %v608_v0 }
  0x5c   :  { %440 = vmatpush3.bf16.msra.mxu1 %v486_v9 }
  0x5d   :  { %441 = vmatprep.subr.bf16.mxu1 %v608_v0  ;;  %458 = vmatpush3.bf16.msra.mxu0 %v493_v16 }
  0x5e   :  { %459 = vmatprep.subr.bf16.mxu0 %v608_v0 }
  0x60   :  { %442 = vmatpush3.bf16.msra.mxu1 %v487_v10 }
  0x61   :  { %443 = vmatprep.subr.bf16.mxu1 %v608_v0  ;;  %460 = vmatpush3.bf16.msra.mxu0 %v494_v27 }
  0x62   :  { %461 = vmatprep.subr.bf16.mxu0 %v608_v0 }
  0x64   :  { %444 = vmatpush3.bf16.msra.mxu1 %v488_v11 }
  0x65   :  { %445 = vmatprep.subr.bf16.mxu1 %v608_v0  ;;  %462 = vmatpush3.bf16.msra.mxu0 %v495_v28 }
  0x66   :  { %463 = vmatprep.subr.bf16.mxu0 %v608_v0 }
  0x68   :  { %446 = vmatpush3.bf16.msra.mxu1 %v489_v12 }
  0x69   :  { %464 = vmatpush3.bf16.msra.mxu0 %v496_v29 }
  0x6a   :  { %465 = vmatprep.subr.bf16.mxu0 %v608_v0 }
  0x6d   :  { %466 = vmatpush3.bf16.msra.mxu0 %v497_v30 }
 0x122   :  { %v138_v18 = vpop.f32.mrb[0].mxu0 }
 0x123   :  { %v139_v19 = vadd.f32 %v384_v17, %v138_v18  ;;  %v429_v20 = vpop.f32.mrb[1].mxu0 }
 0x124   :  { %v141_v21 = vpop.f32.mrb[2].mxu0 }
 0x125   :  { %v142_v22 = vadd.f32 %v384_v17, %v141_v21  ;;  %v430_v23 = vpop.f32.mrb[3].mxu0  ;;  %498 = vtanh.f32 %v139_v19 }
 0x127   :  { %500 = vtanh.f32 %v142_v22 }
 0x12f   :  { %v499_v24 = vpop.eup %498 }
 0x131   :  { %v501_v25 = vpop.eup %500 }
 0x132   :  { %v147_v26 = vpack.c.bf16 %v501_v25, %v499_v24 }
 0x134   :  { %448 = vmatmul.mubr.bf16.vlgmr.msra.gmra.mrb[0].mxu1 %v147_v26 }
 0x207   :  { %v253_v32 = vpop.f32.mrb[0].mxu1 }
 0x208   :  { %v254_v33 = vadd.f32 %v387_v31, %v253_v32  ;;  %v449_v34 = vpop.f32.mrb[1].mxu1 }
 0x209   :  { %v256_v35 = vpop.f32.mrb[2].mxu1 }
 0x20a   :  { %v257_v36 = vadd.f32 %v387_v31, %v256_v35  ;;  %v450_v37 = vpop.f32.mrb[3].mxu1  ;;  %502 = vtanh.f32 %v254_v33 }
 0x20c   :  { %504 = vtanh.f32 %v257_v36 }
 0x214   :  { %v503_v38 = vpop.eup %502 }
 0x216   :  { %v505_v39 = vpop.eup %504 }
 0x217   :  { %v262_v40 = vpack.c.bf16 %v505_v39, %v503_v38 }
 0x219   :  { %468 = vmatmul.mubr.bf16.vlgmr.msra.gmra.mrb[4].mxu0 %v262_v40 }
 0x2ec   :  { %v368_v42 = vpop.f32.mrb[4].mxu0 }
 0x2ed   :  { %v369_v43 = vadd.f32 %v396_v41, %v368_v42  ;;  %v469_v44 = vpop.f32.mrb[5].mxu0 }
 0x2ee   :  { %v371_v45 = vpop.f32.mrb[6].mxu0 }
 0x2ef   :  { %375 = vst [vmem:[%s759_s7] sm:$0xff] %v369_v43  ;;  %v372_v46 = vadd.f32 %v396_v41, %v371_v45  ;;  %v470_v47 = vpop.f32.mrb[7].mxu0 }
 0x2f1   :  { %376 = vst [vmem:[%s759_s7 + $0x8] sm:$0xff] %v372_v46 }
 0x2f2   :  { %381 = vsyncpa [#allocation3], 1 }
 0x2f3   :  { %382 = vsyncpa [#allocation5], 1 }
 0x2f4   :  { %383 = vsyncpa [#allocation8], 1 }

</bundles_post_ra>
